<compile_context>
chip_gen: v6e
topology: v6e:2x2x1
jax: 0.10.0
libtpu: 0.0.40
codegen_flags: <defaults>
</compile_context>

<pallas_src>
import functools
import math

import jax
import jax.numpy as jnp
from jax.experimental import pallas as pl
from jax.experimental.pallas import tpu as pltpu


_LOG_LO = math.log(1e-7)          # clip bounds applied in log space
_LOG_HI = math.log(1.0 - 1e-7)    # (equivalent to clipping p_t itself)


def _round_up(x, m):
    return ((x + m - 1) // m) * m


def _gce_kernel(logits_ref, tgt_ref, out_ref, *, q):
    x = logits_ref[...].astype(jnp.float32)                      # (TM, C)

    # numerically-stable log-softmax pieces; no full softmax materialized
    m = jnp.max(x, axis=-1, keepdims=True)                        # (TM, 1)
    e = jnp.exp(x - m)                                             # (TM, C)
    denom = jnp.sum(e, axis=-1, keepdims=True)                     # (TM, 1)

    # gather x[row, target[row]] via one-hot mask + lane reduction
    cls_ids = jax.lax.broadcasted_iota(jnp.int32, x.shape, dimension=1)
    tgt = tgt_ref[...]                                             # (TM, 1) int32
    x_t = jnp.sum(jnp.where(cls_ids == tgt, x, 0.0),
                  axis=-1, keepdims=True)                          # (TM, 1)

    # log-space epilogue: log p_t = (x_t - m) - log(denom); clip; p_t^q via exp
    log_p = (x_t - m) - jnp.log(denom)
    log_p = jnp.clip(log_p, _LOG_LO, _LOG_HI)
    out_ref[...] = (1.0 - jnp.exp(q * log_p)) * (1.0 / q)          # (TM, 1)


def _choose_tile_m(n, c, itemsize):
    # Target ~2 MiB per logits tile (amortizes per-step pipeline overhead,
    # keeps the kernel near the HBM roofline), but bound the full VMEM live
    # set: double-buffered input tiles plus the two f32 temporaries (x, e).
    target_tile_bytes = 2 * 1024 * 1024
    tm_target = max(8, target_tile_bytes // (c * itemsize))

    bytes_per_row = 2 * c * itemsize + 2 * c * 4   # 2x input bufs + x,e (f32)
    vmem_budget = 36 * 1024 * 1024                 # safe on v7x (64 MiB VMEM)
    tm_vmem = max(8, vmem_budget // bytes_per_row)

    tm = min(tm_target, tm_vmem, _round_up(n, 8), 4096)
    tm = max(8, (tm // 8) * 8)
    return tm


def gce_loss(logits, targets, q=0.7):
    """Generalized Cross-Entropy loss; returns a scalar (mean over batch)."""
    if not 0 < q <= 1:
        raise ValueError("q should be in (0, 1]")
    n, c = logits.shape
    itemsize = logits.dtype.itemsize

    tm = _choose_tile_m(n, c, itemsize)
    n_tiles = pl.cdiv(n, tm)
    n_pad = n_tiles * tm

    if n_pad != n:
        logits = jnp.pad(logits, ((0, n_pad - n), (0, 0)))
        targets = jnp.pad(targets, ((0, n_pad - n),))
    targets_col = targets.astype(jnp.int32).reshape(n_pad, 1)

    # scoped-VMEM budget derived from the live set (input bufs + f32 temps)
    live_bytes = 2 * tm * c * itemsize + 2 * tm * c * 4 + (2 << 20)
    vmem_limit = int(min(48 * 1024 * 1024,
                         max(32 * 1024 * 1024, live_bytes)))

    kernel = functools.partial(_gce_kernel, q=float(q))

    row_losses = pl.pallas_call(
        kernel,
        out_shape=jax.ShapeDtypeStruct((n_pad, 1), jnp.float32),
        grid_spec=pltpu.PrefetchScalarGridSpec(
            num_scalar_prefetch=0,
            grid=(n_tiles,),
            in_specs=[
                pl.BlockSpec((tm, c), lambda i: (i, 0)),   # logits tile
                pl.BlockSpec((tm, 1), lambda i: (i, 0)),   # targets column
            ],
            out_specs=pl.BlockSpec((tm, 1), lambda i: (i, 0)),  # per-tile write
        ),
        compiler_params=pltpu.CompilerParams(
            dimension_semantics=("parallel",),
            vmem_limit_bytes=vmem_limit,
        ),
    )(logits, targets_col)

    # padded rows are dropped here; final reduce + mean in the wrapper
    return jnp.sum(row_losses[:n, 0]) / jnp.float32(n)


def gce_loss_ref(logits, targets, q=0.7):
    """Pure-JAX reference mirroring the PyTorch module."""
    probs = jax.nn.softmax(logits.astype(jnp.float32), axis=1)
    p_t = probs[jnp.arange(targets.shape[0]), targets]
    p_t = jnp.clip(p_t, 1e-7, 1.0 - 1e-7)
    return jnp.mean((1.0 - p_t ** q) / q)


if __name__ == "__main__":
    key = jax.random.PRNGKey(0)
    k1, k2 = jax.random.split(key)

    # small, lane-aligned example: batch=16, classes=128
    N, C = 16, 128
    logits = jax.random.normal(k1, (N, C), dtype=jnp.float32)
    targets = jax.random.randint(k2, (N,), 0, C, dtype=jnp.int32)

    out = jax.block_until_ready(gce_loss(logits, targets, q=0.7))
    ref = gce_loss_ref(logits, targets, q=0.7)
    assert jnp.allclose(out, ref, rtol=1e-5, atol=1e-6), (out, ref)

    # second shape: batch not a multiple of 8 -> exercises padding + slicing
    k3, k4 = jax.random.split(k2)
    N2, C2 = 50, 128
    logits2 = jax.random.normal(k3, (N2, C2), dtype=jnp.float32)
    targets2 = jax.random.randint(k4, (N2,), 0, C2, dtype=jnp.int32)

    out2 = jax.block_until_ready(gce_loss(logits2, targets2, q=0.7))
    ref2 = gce_loss_ref(logits2, targets2, q=0.7)
    assert jnp.allclose(out2, ref2, rtol=1e-5, atol=1e-6), (out2, ref2)

    print("KERNEL_OK")
</pallas_src>

<mosaic_0001>
module attributes {stable_mosaic.version = 11 : i64} {
  func.func @_gce_kernel(%arg0: i32, %arg1: memref<16x128xf32, #tpu.memory_space<vmem>>, %arg2: memref<16x1xi32, #tpu.memory_space<vmem>>, %arg3: memref<16x1xf32, #tpu.memory_space<vmem>>) attributes {dimension_semantics = [#tpu.dimension_semantics<parallel>], iteration_bounds = array<i64: 1>, scalar_prefetch = 0 : i64, scratch_operands = 0 : i64, tpu.core_type = #tpu.core_type<tc>, window_params = [{transform_indices = @transform_0, window_bounds = array<i64: 16, 128>}, {transform_indices = @transform_1, window_bounds = array<i64: 16, 1>}, {transform_indices = @transform_2, window_bounds = array<i64: 16, 1>}]} {
    %c0 = arith.constant 0 : index
    %c0_0 = arith.constant 0 : index
    %0 = vector.load %arg1[%c0, %c0_0] : memref<16x128xf32, #tpu.memory_space<vmem>>, vector<16x128xf32>
    %cst = arith.constant dense<0xFF800000> : vector<16xf32>
    %1 = vector.multi_reduction <maximumf>, %0, %cst [1] : vector<16x128xf32> to vector<16xf32>
    %2 = vector.shape_cast %1 : vector<16xf32> to vector<16x1xf32>
    %3 = vector.broadcast %2 : vector<16x1xf32> to vector<16x128xf32>
    %4 = arith.subf %0, %3 : vector<16x128xf32>
    %5 = math.exp %4 : vector<16x128xf32>
    %cst_1 = arith.constant dense<0.000000e+00> : vector<16xf32>
    %6 = vector.multi_reduction <add>, %5, %cst_1 [1] : vector<16x128xf32> to vector<16xf32>
    %7 = vector.shape_cast %6 : vector<16xf32> to vector<16x1xf32>
    %8 = tpu.iota {dimensions = array<i32: 1>} : vector<16x128xi32>
    %c0_2 = arith.constant 0 : index
    %c0_3 = arith.constant 0 : index
    %9 = vector.load %arg2[%c0_2, %c0_3] : memref<16x1xi32, #tpu.memory_space<vmem>>, vector<16x1xi32>
    %10 = vector.broadcast %9 : vector<16x1xi32> to vector<16x128xi32>
    %11 = arith.cmpi eq, %8, %10 : vector<16x128xi32>
    %cst_4 = arith.constant 0.000000e+00 : f32
    %12 = vector.broadcast %cst_4 : f32 to vector<16x128xf32>
    %13 = arith.select %11, %0, %12 : vector<16x128xi1>, vector<16x128xf32>
    %cst_5 = arith.constant dense<0.000000e+00> : vector<16xf32>
    %14 = vector.multi_reduction <add>, %13, %cst_5 [1] : vector<16x128xf32> to vector<16xf32>
    %15 = vector.shape_cast %14 : vector<16xf32> to vector<16x1xf32>
    %16 = arith.subf %15, %2 : vector<16x1xf32>
    %17 = math.log %7 : vector<16x1xf32>
    %18 = arith.subf %16, %17 : vector<16x1xf32>
    %cst_6 = arith.constant -16.1180954 : f32
    %cst_7 = arith.constant -1.00000008E-7 : f32
    %19 = vector.broadcast %cst_6 : f32 to vector<16x1xf32>
    %20 = arith.maximumf %19, %18 : vector<16x1xf32>
    %21 = vector.broadcast %cst_7 : f32 to vector<16x1xf32>
    %22 = arith.minimumf %21, %20 : vector<16x1xf32>
    %cst_8 = arith.constant 0.699999988 : f32
    %23 = vector.broadcast %cst_8 : f32 to vector<16x1xf32>
    %24 = arith.mulf %23, %22 : vector<16x1xf32>
    %25 = math.exp %24 : vector<16x1xf32>
    %cst_9 = arith.constant 1.000000e+00 : f32
    %26 = vector.broadcast %cst_9 : f32 to vector<16x1xf32>
    %27 = arith.subf %26, %25 : vector<16x1xf32>
    %cst_10 = arith.constant 1.42857146 : f32
    %28 = vector.broadcast %cst_10 : f32 to vector<16x1xf32>
    %29 = arith.mulf %27, %28 : vector<16x1xf32>
    %c0_11 = arith.constant 0 : index
    %c0_12 = arith.constant 0 : index
    %30 = vector.load %arg3[%c0_11, %c0_12] : memref<16x1xf32, #tpu.memory_space<vmem>>, vector<16x1xf32>
    tpu.vector_store %arg3[%c0_11, %c0_12], %29 {strides = array<i32>} : memref<16x1xf32, #tpu.memory_space<vmem>>, vector<16x1xf32>,
    return
  }
  func.func @transform_0(%arg0: i32) -> (i32, i32) {
    %c0_i32 = arith.constant 0 : i32
    %c0_i32_0 = arith.constant 0 : i32
    return %arg0, %c0_i32 : i32, i32
  }
  func.func @transform_1(%arg0: i32) -> (i32, i32) {
    %c0_i32 = arith.constant 0 : i32
    %c0_i32_0 = arith.constant 0 : i32
    return %arg0, %c0_i32 : i32, i32
  }
  func.func @transform_2(%arg0: i32) -> (i32, i32) {
    %c0_i32 = arith.constant 0 : i32
    %c0_i32_0 = arith.constant 0 : i32
    return %arg0, %c0_i32 : i32, i32
  }
}

</mosaic_0001>

<bundles_post_ra>
// kernel: tpu_custom_call.1
= control target key start
LH: loop header
LB: loop body
LE: loop exit
PB: predicated region body
PF: predicated region fallthrough
CT: control target
= control target key end

     0   :  { %v89_v1 = vmov 0   ;;  %v27_v11 = vlaneseq  ;;  %vm67_vm2 = vcmask 7168   ;;  %s123_s0 = inlined_call_operand.vmem [shape: f32[16,128], index: 0, kind: input, shape index: {}]   ;;  %s124_s1 = inlined_call_operand.vmem [shape: s32[16,1], index: 1, kind: input, shape index: {}]   ;;  %s125_s2 = inlined_call_operand.vmem [shape: f32[16,1], index: 2, kind: output, shape index: {}]  }
   0x1   :  { %v11_v0 = vld [vmem:[%s123_s0] sm:$0xff]  ;;  %75 = vset.pattern.permute.xlu1 %v89_v1  ;;  %76 = vset.pattern.permute.xlu0 %v89_v1  ;;  %v12_v3 = vld [vmem:[%s123_s0 + $0x8] sm:$0xff] }
   0x2   :  { %v29_v2 = vld [vmem:[%s124_s1] sm:$0xff]  ;;  %13 = vmax.xlane.f32.xlu0 %v11_v0  ;;  %v30_v4 = vld [vmem:[%s124_s1 + $0x8] sm:$0xff]  ;;  %v28_v13 = vand.u32 127, %v27_v11 }
   0x3   :  { %32 = vperm.xlu1 %75, %v29_v2  }
   0x6   :  { %15 = vmax.xlane.f32.xlu0 %v12_v3 }
   0x7   :  { %35 = vperm.xlu1 %75, %v30_v4  }
  0x7e   :  { %v33_v12 = vpop.permute.xlu1 %32 }
  0x7f   :  { %vm37_vm0 = vcmp.eq.s32.totalorder %v28_v13, %v33_v12 }
  0x80   :  { %v39_v16 = vsel %vm37_vm0, %v11_v0, 0.0 }
  0x82   :  { %v36_v15 = vpop.permute.xlu1 %35 }
  0x83   :  { %vm38_vm1 = vcmp.eq.s32.totalorder %v28_v13, %v36_v15 }
  0x84   :  { %v40_v18 = vsel %vm38_vm1, %v12_v3, 0.0 }
  0x8b   :  { %v14_v5 = vpop.xlane.xlu0 %13 }
  0x8c   :  { %v17_v6 = vsub.f32 %v11_v0, %v14_v5 }
  0x8e   :  { %v19_v7 = vmul.f32 1.442695, %v17_v6 }
  0x8f   :  { %v16_v8 = vpop.xlane.xlu0 %15 }
  0x90   :  { %77 = vpow2.f32 %v19_v7  ;;  %v18_v9 = vsub.f32 %v12_v3, %v16_v8 }
  0x92   :  { %v21_v10 = vmul.f32 1.442695, %v18_v9 }
  0x94   :  { %79 = vpow2.f32 %v21_v10 }
  0x9d   :  { %v78_v14 = vpop.eup %77 }
  0x9e   :  { %23 = vadd.xlane.f32.xlu0 %v78_v14 }
  0xa1   :  { %v80_v17 = vpop.eup %79 }
  0xa2   :  { %25 = vadd.xlane.f32.xlu1 %v80_v17  ;;  %41 = vadd.xlane.f32.xlu0 %v39_v16 }
  0xa6   :  { %43 = vadd.xlane.f32.xlu0 %v40_v18 }
 0x127   :  { %v24_v19 = vpop.xlane.xlu0 %23 }
 0x128   :  { %81 = vlog2.f32 %v24_v19 }
 0x12b   :  { %v26_v20 = vpop.xlane.xlu1 %25  ;;  %v42_v21 = vpop.xlane.xlu0 %41 }
 0x12c   :  { %83 = vlog2.f32 %v26_v20  ;;  %v45_v24 = vsub.f32 %v42_v21, %v14_v5 }
 0x12f   :  { %v44_v25 = vpop.xlane.xlu0 %43 }
 0x130   :  { %v46_v30 = vsub.f32 %v44_v25, %v16_v8 }
 0x135   :  { %v82_v22 = vpop.eup %81 }
 0x136   :  { %v48_v23 = vmul.f32 0.6931472, %v82_v22 }
 0x138   :  { %v51_v26 = vsub.f32 %v45_v24, %v48_v23 }
 0x139   :  { %v84_v27 = vpop.eup %83 }
 0x13a   :  { %v50_v28 = vmul.f32 0.6931472, %v84_v27  ;;  %v53_v29 = vmax.f32 %v51_v26, -16.118095 }
 0x13c   :  { %v55_v31 = vmin.f32 %v53_v29, -1.0000001e-07  ;;  %v52_v32 = vsub.f32 %v46_v30, %v50_v28 }
 0x13e   :  { %v57_v33 = vmul.f32 0.7, %v55_v31  ;;  %v54_v34 = vmax.f32 %v52_v32, -16.118095 }
 0x140   :  { %v59_v35 = vmul.f32 1.442695, %v57_v33  ;;  %v56_v36 = vmin.f32 %v54_v34, -1.0000001e-07 }
 0x142   :  { %85 = vpow2.f32 %v59_v35  ;;  %v58_v37 = vmul.f32 0.7, %v56_v36 }
 0x144   :  { %v61_v38 = vmul.f32 1.442695, %v58_v37 }
 0x146   :  { %87 = vpow2.f32 %v61_v38 }
 0x14f   :  { %v86_v39 = vpop.eup %85 }
 0x150   :  { %v63_v40 = vsub.f32 1.0, %v86_v39 }
 0x152   :  { %v65_v41 = vmul.f32 1.4285715, %v63_v40 }
 0x153   :  { %v88_v42 = vpop.eup %87 }
 0x154   :  { %68 = vst.msk [vmem:[%s125_s2] sm:$0xff] %vm67_vm2, %v65_v41  ;;  %v64_v43 = vsub.f32 1.0, %v88_v42 }
 0x156   :  { %v66_v44 = vmul.f32 1.4285715, %v64_v43 }
 0x158   :  { %69 = vst.msk [vmem:[%s125_s2 + $0x8] sm:$0xff] %vm67_vm2, %v66_v44 }

</bundles_post_ra>
